<compile_context>
chip_gen: v7x
topology: tpu7x:2x2x1
jax: 0.10.0
libtpu: 0.0.40
codegen_flags: <defaults>
</compile_context>

<pallas_src>
import functools

import jax
import jax.numpy as jnp
import numpy as np
from jax.experimental import pallas as pl
from jax.experimental.pallas import tpu as pltpu


# ----------------------------- helpers --------------------------------------


def _round_up(v, m):
    return ((v + m - 1) // m) * m


def _pad2(x, rows, cols):
    return jnp.pad(x, ((0, rows - x.shape[0]), (0, cols - x.shape[1])))


def _pick_tile(n_p, preferred):
    for t in preferred:
        if n_p % t == 0:
            return t
    return n_p


# ----------------------------- kernel ---------------------------------------


def _sage_layer_kernel(a_ref, x_ref, xs_ref, w_ref, b_ref, out_ref, acc_ref,
                       *, apply_relu):
    """One SAGEConv layer, tiled over (row-tile i, reduction tile k)."""
    k = pl.program_id(1)

    @pl.when(k == 0)
    def _():
        acc_ref[...] = jnp.zeros_like(acc_ref)

    # Aggregation matmul on the MXU: bf16 A tile x bf16 X tile, f32 accumulate.
    acc_ref[...] += jnp.dot(a_ref[...], x_ref[...],
                            preferred_element_type=jnp.float32)

    @pl.when(k == pl.num_programs(1) - 1)
    def _():
        # Fused lin_l / lin_r: [agg | x_self] @ [[W_l],[W_r]] + b
        cat = jnp.concatenate(
            [acc_ref[...], xs_ref[...].astype(jnp.float32)], axis=-1)
        h = jnp.dot(cat, w_ref[...],
                    preferred_element_type=jnp.float32) + b_ref[...]
        if apply_relu:
            h = jnp.maximum(h, 0.0)
        out_ref[...] = h


def _sage_layer(a_bf16, x_bf16, w_cat, bias, *, apply_relu):
    """a_bf16: [Np, Np] bf16 row-normalized adjacency (padded).
    x_bf16: [Np, Cp] bf16 node features (padded).
    w_cat:  [2*Cp, Hp] f32 stacked [W_l; W_r].  bias: [1, Hp] f32.
    Returns [Np, Hp] f32."""
    n_p = a_bf16.shape[0]
    c_p = x_bf16.shape[1]
    h_p = w_cat.shape[1]

    # 128-multiple tiles: MXU-friendly on v5e/v6e/v7x, well under the 16 MiB
    # (v5e) / 32 MiB (v6e, v7x) scoped-VMEM budgets even with double buffering
    # (A tile bf16 128x512 = 128 KiB; X tile 512x128 bf16 = 128 KiB).
    tm = _pick_tile(n_p, (128,))
    tk = _pick_tile(n_p, (512, 256, 128))
    grid = (n_p // tm, n_p // tk)

    kernel = functools.partial(_sage_layer_kernel, apply_relu=apply_relu)

    return pl.pallas_call(
        kernel,
        out_shape=jax.ShapeDtypeStruct((n_p, h_p), jnp.float32),
        grid_spec=pltpu.PrefetchScalarGridSpec(
            num_scalar_prefetch=0,
            grid=grid,
            in_specs=[
                pl.BlockSpec((tm, tk), lambda i, k: (i, k)),       # A tile
                pl.BlockSpec((tk, c_p), lambda i, k: (k, 0)),      # neighbor X
                pl.BlockSpec((tm, c_p), lambda i, k: (i, 0)),      # self X rows
                pl.BlockSpec((2 * c_p, h_p), lambda i, k: (0, 0)),  # fused W (resident)
                pl.BlockSpec((1, h_p), lambda i, k: (0, 0)),        # bias (resident)
            ],
            out_specs=pl.BlockSpec((tm, h_p), lambda i, k: (i, 0)),
            scratch_shapes=[pltpu.VMEM((tm, c_p), jnp.float32)],
        ),
        compiler_params=pltpu.CompilerParams(
            dimension_semantics=("parallel", "arbitrary"),
            vmem_limit_bytes=32 * 1024 * 1024,
        ),
    )(a_bf16, x_bf16, x_bf16, w_cat, bias)


# ----------------------------- wrapper --------------------------------------


def graphsage_forward(x, edge_index, params):
    """x: [N, C_in] float32; edge_index: [2, E] int32 (row0=src, row1=dst)."""
    wl1, bl1, wr1, wl2, bl2, wr2 = params
    n, c_in = x.shape
    hid = wl1.shape[1]
    out_c = wl2.shape[1]

    n_p = _round_up(n, 128)
    c_p = _round_up(c_in, 128)
    h_p = _round_up(hid, 128)
    o_p = _round_up(out_c, 128)

    # Dense row-normalized adjacency (glue): mean over incoming edges, with
    # edge multiplicity; zero-in-degree rows stay all-zero.
    src, dst = edge_index[0], edge_index[1]
    a = jnp.zeros((n, n), jnp.float32).at[dst, src].add(1.0)
    deg = jnp.sum(a, axis=1, keepdims=True)
    a = a / jnp.maximum(deg, 1.0)
    a_p = _pad2(a, n_p, n_p).astype(jnp.bfloat16)

    x_p = _pad2(x, n_p, c_p).astype(jnp.bfloat16)

    # Fused per-layer weights: [W_l; W_r] stacked on the contraction dim.
    w1 = jnp.concatenate([_pad2(wl1, c_p, h_p), _pad2(wr1, c_p, h_p)], axis=0)
    b1 = _pad2(bl1, 1, h_p)
    w2 = jnp.concatenate([_pad2(wl2, h_p, o_p), _pad2(wr2, h_p, o_p)], axis=0)
    b2 = _pad2(bl2, 1, o_p)

    # Layer 1 (+ ReLU), then layer 2 as a second pipelined pass over all rows.
    h1_p = _sage_layer(a_p, x_p, w1, b1, apply_relu=True)        # [Np, Hp] f32
    emb_p = _sage_layer(a_p, h1_p.astype(jnp.bfloat16), w2, b2,
                        apply_relu=False)                         # [Np, Op] f32

    emb = emb_p[:n, :out_c]
    # global_mean_pool(batch=None): mean over all (real) nodes -> [1, C_out].
    pooled = jnp.mean(emb, axis=0, keepdims=True)
    return pooled, emb


# ----------------------------- reference & init -----------------------------


def _reference(x, edge_index, params):
    wl1, bl1, wr1, wl2, bl2, wr2 = params
    n = x.shape[0]
    src, dst = edge_index[0], edge_index[1]
    a = jnp.zeros((n, n), jnp.float32).at[dst, src].add(1.0)
    deg = jnp.sum(a, axis=1, keepdims=True)
    a = a / jnp.maximum(deg, 1.0)
    h1 = jnp.maximum(a @ x @ wl1 + bl1 + x @ wr1, 0.0)
    emb = a @ h1 @ wl2 + bl2 + h1 @ wr2
    pooled = jnp.mean(emb, axis=0, keepdims=True)
    return pooled, emb


def init_params(key, in_channels, hidden_channels, out_channels):
    """Deterministic synthetic weights (PyG Linear weights stored transposed
    as [in, out] so the kernel computes x @ W)."""
    ks = jax.random.split(key, 6)

    def glorot(k, fan_in, fan_out):
        lim = jnp.sqrt(6.0 / (fan_in + fan_out))
        return jax.random.uniform(k, (fan_in, fan_out), jnp.float32, -lim, lim)

    wl1 = glorot(ks[0], in_channels, hidden_channels)
    bl1 = 0.01 * jax.random.normal(ks[1], (1, hidden_channels), jnp.float32)
    wr1 = glorot(ks[2], in_channels, hidden_channels)
    wl2 = glorot(ks[3], hidden_channels, out_channels)
    bl2 = 0.01 * jax.random.normal(ks[4], (1, out_channels), jnp.float32)
    wr2 = glorot(ks[5], hidden_channels, out_channels)
    return (wl1, bl1, wr1, wl2, bl2, wr2)


if __name__ == "__main__":
    key = jax.random.PRNGKey(0)
    k_x, k_e, k_p = jax.random.split(key, 3)

    N, IN_C, HID, OUT_C, E = 8, 4, 32, 16, 16

    x = jax.random.normal(k_x, (N, IN_C), jnp.float32)
    edge_index = jax.random.randint(k_e, (2, E), 0, N, jnp.int32)
    params = init_params(k_p, IN_C, HID, OUT_C)

    pooled, emb = graphsage_forward(x, edge_index, params)
    jax.block_until_ready((pooled, emb))

    # f32 reference check (kernel uses bf16 A/X with f32 accumulation).
    pooled_ref, emb_ref = _reference(x, edge_index, params)
    np.testing.assert_allclose(np.asarray(emb), np.asarray(emb_ref),
                               rtol=5e-2, atol=5e-2)
    np.testing.assert_allclose(np.asarray(pooled), np.asarray(pooled_ref),
                               rtol=5e-2, atol=5e-2)

    assert pooled.shape == (1, OUT_C)
    assert emb.shape == (N, OUT_C)
    print("KERNEL_OK")
</pallas_src>

<mosaic_0001>
module attributes {stable_mosaic.version = 11 : i64} {
  func.func @_sage_layer_kernel(%arg0: i32, %arg1: i32, %arg2: memref<128x128xbf16, #tpu.memory_space<vmem>>, %arg3: memref<128x128xbf16, #tpu.memory_space<vmem>>, %arg4: memref<128x128xbf16, #tpu.memory_space<vmem>>, %arg5: memref<256x128xf32, #tpu.memory_space<vmem>>, %arg6: memref<1x128xf32, #tpu.memory_space<vmem>>, %arg7: memref<128x128xf32, #tpu.memory_space<vmem>>, %arg8: memref<128x128xf32, #tpu.memory_space<vmem>>) attributes {dimension_semantics = [#tpu.dimension_semantics<parallel>, #tpu.dimension_semantics<arbitrary>], iteration_bounds = array<i64: 1, 1>, scalar_prefetch = 0 : i64, scratch_operands = 1 : i64, tpu.core_type = #tpu.core_type<tc>, window_params = [{transform_indices = @transform_0, window_bounds = array<i64: 128, 128>}, {transform_indices = @transform_1, window_bounds = array<i64: 128, 128>}, {transform_indices = @transform_2, window_bounds = array<i64: 128, 128>}, {pipeline_mode = #tpu.pipeline_mode<synchronous>, transform_indices = @transform_3, window_bounds = array<i64: 256, 128>}, {pipeline_mode = #tpu.pipeline_mode<synchronous>, transform_indices = @transform_4, window_bounds = array<i64: 1, 128>}, {transform_indices = @transform_5, window_bounds = array<i64: 128, 128>}]} {
    %c0_i32 = arith.constant 0 : i32
    %0 = arith.cmpi eq, %arg1, %c0_i32 : i32
    %1 = arith.extui %0 : i1 to i32
    %c0_i32_0 = arith.constant 0 : i32
    %2 = arith.cmpi ne, %1, %c0_i32_0 : i32
    scf.if %2 {
      %cst_10 = arith.constant 0.000000e+00 : f32
      %12 = vector.broadcast %cst_10 : f32 to vector<128x128xf32>
      %c0_11 = arith.constant 0 : index
      %c0_12 = arith.constant 0 : index
      %13 = vector.load %arg8[%c0_11, %c0_12] : memref<128x128xf32, #tpu.memory_space<vmem>>, vector<128x128xf32>
      tpu.vector_store %arg8[%c0_11, %c0_12], %12 {strides = array<i32>} : memref<128x128xf32, #tpu.memory_space<vmem>>, vector<128x128xf32>,
    } else {
    }
    %c0 = arith.constant 0 : index
    %c0_1 = arith.constant 0 : index
    %3 = vector.load %arg8[%c0, %c0_1] : memref<128x128xf32, #tpu.memory_space<vmem>>, vector<128x128xf32>
    %c0_2 = arith.constant 0 : index
    %c0_3 = arith.constant 0 : index
    %4 = vector.load %arg2[%c0_2, %c0_3] : memref<128x128xbf16, #tpu.memory_space<vmem>>, vector<128x128xbf16>
    %c0_4 = arith.constant 0 : index
    %c0_5 = arith.constant 0 : index
    %5 = vector.load %arg3[%c0_4, %c0_5] : memref<128x128xbf16, #tpu.memory_space<vmem>>, vector<128x128xbf16>
    %cst = arith.constant dense<0.000000e+00> : vector<128x128xf32>
    %6 = tpu.matmul %4, %5, %cst {dimension_numbers = #tpu.dot_dimension_numbers<[1], [0], [0], [1], [0, 0, 1, 1], [], []>} : vector<128x128xbf16>, vector<128x128xbf16>, vector<128x128xf32> -> vector<128x128xf32>
    %7 = arith.addf %3, %6 : vector<128x128xf32>
    %c0_6 = arith.constant 0 : index
    %c0_7 = arith.constant 0 : index
    %8 = vector.load %arg8[%c0_6, %c0_7] : memref<128x128xf32, #tpu.memory_space<vmem>>, vector<128x128xf32>
    tpu.vector_store %arg8[%c0_6, %c0_7], %7 {strides = array<i32>} : memref<128x128xf32, #tpu.memory_space<vmem>>, vector<128x128xf32>,
    %c0_i32_8 = arith.constant 0 : i32
    %9 = arith.cmpi eq, %arg1, %c0_i32_8 : i32
    %10 = arith.extui %9 : i1 to i32
    %c0_i32_9 = arith.constant 0 : i32
    %11 = arith.cmpi ne, %10, %c0_i32_9 : i32
    scf.if %11 {
      %c0_10 = arith.constant 0 : index
      %c0_11 = arith.constant 0 : index
      %12 = vector.load %arg8[%c0_10, %c0_11] : memref<128x128xf32, #tpu.memory_space<vmem>>, vector<128x128xf32>
      %c0_12 = arith.constant 0 : index
      %c0_13 = arith.constant 0 : index
      %13 = vector.load %arg4[%c0_12, %c0_13] : memref<128x128xbf16, #tpu.memory_space<vmem>>, vector<128x128xbf16>
      %14 = arith.extf %13 : vector<128x128xbf16> to vector<128x128xf32>
      %15 = tpu.concatenate %12, %14 in 1 : vector<128x128xf32>, vector<128x128xf32> -> vector<128x256xf32>
      %c0_14 = arith.constant 0 : index
      %c0_15 = arith.constant 0 : index
      %16 = vector.load %arg5[%c0_14, %c0_15] : memref<256x128xf32, #tpu.memory_space<vmem>>, vector<256x128xf32>
      %cst_16 = arith.constant dense<0.000000e+00> : vector<128x128xf32>
      %17 = tpu.matmul %15, %16, %cst_16 {dimension_numbers = #tpu.dot_dimension_numbers<[1], [0], [0], [1], [0, 0, 1, 1], [], []>} : vector<128x256xf32>, vector<256x128xf32>, vector<128x128xf32> -> vector<128x128xf32>
      %c0_17 = arith.constant 0 : index
      %c0_18 = arith.constant 0 : index
      %18 = vector.load %arg6[%c0_17, %c0_18] : memref<1x128xf32, #tpu.memory_space<vmem>>, vector<1x128xf32>
      %19 = vector.broadcast %18 : vector<1x128xf32> to vector<128x128xf32>
      %20 = arith.addf %17, %19 : vector<128x128xf32>
      %cst_19 = arith.constant 0.000000e+00 : f32
      %21 = vector.broadcast %cst_19 : f32 to vector<128x128xf32>
      %22 = arith.maximumf %20, %21 : vector<128x128xf32>
      %c0_20 = arith.constant 0 : index
      %c0_21 = arith.constant 0 : index
      %23 = vector.load %arg7[%c0_20, %c0_21] : memref<128x128xf32, #tpu.memory_space<vmem>>, vector<128x128xf32>
      tpu.vector_store %arg7[%c0_20, %c0_21], %22 {strides = array<i32>} : memref<128x128xf32, #tpu.memory_space<vmem>>, vector<128x128xf32>,
    } else {
    }
    return
  }
  func.func @transform_0(%arg0: i32, %arg1: i32) -> (i32, i32) {
    %c0_i32 = arith.constant 0 : i32
    return %arg0, %arg1 : i32, i32
  }
  func.func @transform_1(%arg0: i32, %arg1: i32) -> (i32, i32) {
    %c0_i32 = arith.constant 0 : i32
    %c0_i32_0 = arith.constant 0 : i32
    return %arg1, %c0_i32 : i32, i32
  }
  func.func @transform_2(%arg0: i32, %arg1: i32) -> (i32, i32) {
    %c0_i32 = arith.constant 0 : i32
    %c0_i32_0 = arith.constant 0 : i32
    return %arg0, %c0_i32 : i32, i32
  }
  func.func @transform_3(%arg0: i32, %arg1: i32) -> (i32, i32) {
    %c0_i32 = arith.constant 0 : i32
    %c0_i32_0 = arith.constant 0 : i32
    %c0_i32_1 = arith.constant 0 : i32
    return %c0_i32, %c0_i32_0 : i32, i32
  }
  func.func @transform_4(%arg0: i32, %arg1: i32) -> (i32, i32) {
    %c0_i32 = arith.constant 0 : i32
    %c0_i32_0 = arith.constant 0 : i32
    %c0_i32_1 = arith.constant 0 : i32
    return %c0_i32, %c0_i32_0 : i32, i32
  }
  func.func @transform_5(%arg0: i32, %arg1: i32) -> (i32, i32) {
    %c0_i32 = arith.constant 0 : i32
    %c0_i32_0 = arith.constant 0 : i32
    return %arg0, %c0_i32 : i32, i32
  }
}

</mosaic_0001>

<bundles_post_ra>
// kernel: tpu_custom_call.1
= control target key start
LH: loop header
LB: loop body
LE: loop exit
PB: predicated region body
PF: predicated region fallthrough
CT: control target
= control target key end

     0   :  { %10 = vsyncpa [#allocation4], 0  ;;  %s1180_s0 = inlined_call_operand.hbm [shape: bf16[128,128], index: 0, kind: input, shape index: {}]   ;;  %s1181_s1 = inlined_call_operand.hbm [shape: bf16[128,128], index: 1, kind: input, shape index: {}]   ;;  %s1182_s2 = inlined_call_operand.hbm [shape: bf16[128,128], index: 2, kind: input, shape index: {}]   ;;  %s1183_s3 = inlined_call_operand.hbm [shape: f32[256,128], index: 3, kind: input, shape index: {}]   ;;  %s1184_s4 = inlined_call_operand.vmem [shape: f32[1,128], index: 4, kind: input, shape index: {}]   ;;  %s1185_s5 = inlined_call_operand.hbm [shape: f32[128,128], index: 5, kind: output, shape index: {}]  }
   0x1   :  { %11 = vsyncpa [#allocation7], 0 }
   0x2   :  { %12 = vsyncpa [#allocation10], 0 }
   0x3   :  { %13 = vsyncpa [#allocation5], 0  ;;  %s1031_s18 = smov [#allocation6]   ;;  %s1032_s20 = smov [#allocation3]  }
   0x4   :  { %s31_s19 = sshll.u32 %s1031_s18, 4  ;;  %s19_s21 = sshll.u32 %s1032_s20, 4  ;;  %s32_s19 = int_to_ptr.vmem [resolvable:$true] %s31_s19  ;;  %s1070_s21 = int_to_ptr.vmem [resolvable:$true] %s19_s21 }
   0x5   :  { %s913_s24 = scalar_lea.hbm %s1181_s1, 1024 }
   0x6   :  { %p914_p0 = scmp.ne.s32.totalorder %s1181_s1, %s913_s24  ;;  %p917_p1 = scmp.lt.u32.totalorder %s913_s24, %s1181_s1 }
   0x8   :  { %p919_p2 = pnand %p917_p1, %p914_p0 }
   0xa   :  { %922 = shalt.err (!%p919_p2)
}
   0xb   :  { %s923_s29 = scalar_lea.vmem %s32_s19, 1024  ;;  %p928_p4 = scmp.lt.s32.totalorder %s32_s19, %s32_s19 }
   0xc   :  { %p924_p3 = scmp.ne.s32.totalorder %s32_s19, %s923_s29  ;;  %p929_p5 = scmp.lt.s32.totalorder %s923_s29, %s923_s29 }
   0xe   :  { %p930_p6 = por %p929_p5, %p928_p4 }
  0x10   :  { %p931_p7 = pnand %p930_p6, %p924_p3 }
  0x12   :  { %934 = shalt.err (!%p931_p7)
}
  0x13   :  { %s1033_s30 = smov 64   ;;  %s1034_s6 = smov 4  }
  0x14   :  { %37 = dma.hbm_to_vmem [thread:$0]  %s1181_s1, 1024, %s32_s19, [#allocation7], %s1033_s30, %s1033_s30, %s1034_s6  }
  0x15   :  { %s935_s11 = scalar_lea.hbm %s1180_s0, 1024 }
  0x16   :  { %p936_p8 = scmp.ne.s32.totalorder %s1180_s0, %s935_s11  ;;  %p939_p9 = scmp.lt.u32.totalorder %s935_s11, %s1180_s0 }
  0x18   :  { %p941_p10 = pnand %p939_p9, %p936_p8 }
  0x1a   :  { %944 = shalt.err (!%p941_p10)
}
  0x1b   :  { %s945_s16 = scalar_lea.vmem %s1070_s21, 1024  ;;  %p950_p12 = scmp.lt.s32.totalorder %s1070_s21, %s1070_s21 }
  0x1c   :  { %p946_p11 = scmp.ne.s32.totalorder %s1070_s21, %s945_s16  ;;  %p951_p13 = scmp.lt.s32.totalorder %s945_s16, %s945_s16 }
  0x1e   :  { %p952_p0 = por %p951_p13, %p950_p12 }
  0x20   :  { %p953_p1 = pnand %p952_p0, %p946_p11 }
  0x22   :  { %956 = shalt.err (!%p953_p1)
}
  0x23   :  { %25 = dma.hbm_to_vmem [thread:$0]  %s1180_s0, 1024, %s1070_s21, [#allocation4], %s1033_s30, %s1033_s30, %s1034_s6  }
  0x24   :  { %s1035_s18 = smov [#allocation8]   ;;  %s1036_s20 = smov [#allocation9]  }
  0x25   :  { %s43_s19 = sshll.u32 %s1035_s18, 4  ;;  %s55_s22 = sshll.u32 %s1036_s20, 4  ;;  %s44_s19 = int_to_ptr.vmem [resolvable:$true] %s43_s19  ;;  %s1107_s22 = int_to_ptr.vmem [resolvable:$true] %s55_s22 }
  0x26   :  { %s957_s25 = scalar_lea.hbm %s1182_s2, 1024 }
  0x27   :  { %p958_p2 = scmp.ne.s32.totalorder %s1182_s2, %s957_s25  ;;  %p961_p3 = scmp.lt.u32.totalorder %s957_s25, %s1182_s2 }
  0x29   :  { %p963_p4 = pnand %p961_p3, %p958_p2 }
  0x2b   :  { %966 = shalt.err (!%p963_p4)
}
  0x2c   :  { %s967_s0 = scalar_lea.vmem %s44_s19, 1024  ;;  %p972_p6 = scmp.lt.s32.totalorder %s44_s19, %s44_s19 }
  0x2d   :  { %p968_p5 = scmp.ne.s32.totalorder %s44_s19, %s967_s0  ;;  %p973_p7 = scmp.lt.s32.totalorder %s967_s0, %s967_s0 }
  0x2f   :  { %p974_p8 = por %p973_p7, %p972_p6 }
  0x31   :  { %p975_p9 = pnand %p974_p8, %p968_p5 }
  0x33   :  { %978 = shalt.err (!%p975_p9)
}
  0x34   :  { %49 = dma.hbm_to_vmem [thread:$0]  %s1182_s2, 1024, %s44_s19, [#allocation7], %s1033_s30, %s1033_s30, %s1034_s6  }
  0x35   :  { %s979_s10 = scalar_lea.hbm %s1183_s3, 4096 }
  0x36   :  { %p980_p10 = scmp.ne.s32.totalorder %s1183_s3, %s979_s10  ;;  %p983_p11 = scmp.lt.u32.totalorder %s979_s10, %s1183_s3 }
  0x38   :  { %p985_p12 = pnand %p983_p11, %p980_p10 }
  0x3a   :  { %988 = shalt.err (!%p985_p12)
}
  0x3b   :  { %s989_s15 = scalar_lea.vmem %s1107_s22, 4096  ;;  %p994_p0 = scmp.lt.s32.totalorder %s1107_s22, %s1107_s22 }
  0x3c   :  { %p990_p13 = scmp.ne.s32.totalorder %s1107_s22, %s989_s15  ;;  %p995_p1 = scmp.lt.s32.totalorder %s989_s15, %s989_s15 }
  0x3e   :  { %p996_p2 = por %p995_p1, %p994_p0 }
  0x40   :  { %p997_p3 = pnand %p996_p2, %p990_p13 }
  0x42   :  { %1000 = shalt.err (!%p997_p3)
}
  0x43   :  { %s1037_s2 = smov 128   ;;  %s1038_s30 = smov 8  }
  0x44   :  { %61 = dma.hbm_to_vmem [thread:$0]  %s1183_s3, 4096, %s1107_s22, [#allocation10], %s1037_s2, %s1037_s2, %s1038_s30  }
  0x45   :  { %1023 = dma.done.wait [#allocation4], 1024  }
  0x46   :  { %1024 = vsyncadd [#allocation4], 4294966272 }
  0x47   :  { %1025 = dma.done.wait [#allocation7], 2048  }
  0x48   :  { %1026 = vsyncadd [#allocation7], 4294965248 }
  0x49   :  { %1027 = dma.done.wait [#allocation10], 4096  }
  0x4a   :  { %1028 = vsyncadd [#allocation10], 4294963200  ;;  %v897_v0 = vld [vmem:[#allocation6] sm:$0xff]   ;;  %v898_v1 = vld [vmem:[#allocation6 + $0x8] sm:$0xff]  }
  0x4b   :  { %808 = vmatprep.subr.bf16.mxu0 %v897_v0  ;;  %v899_v2 = vld [vmem:[#allocation6 + $0x10] sm:$0xff]   ;;  %v900_v3 = vld [vmem:[#allocation6 + $0x18] sm:$0xff]   ;;  %v905_v4 = vld [vmem:[#allocation3] sm:$0xff]  }
  0x4c   :  { %809 = vmatpush3.bf16.msra.mxu0 %v897_v0  ;;  %824 = vmatprep.mubr.bf16.mxu0 %v905_v4  ;;  %v901_v5 = vld [vmem:[#allocation6 + $0x20] sm:$0xff]   ;;  %v902_v6 = vld [vmem:[#allocation6 + $0x28] sm:$0xff]   ;;  %v439_v12 = vld [vmem:[#allocation9 + $0x90] sm:$0xff] }
  0x4d   :  { %810 = vmatprep.subr.bf16.mxu0 %v898_v1  ;;  %v437_v7 = vld [vmem:[#allocation9 + $0x80] sm:$0xff]  ;;  %v438_v8 = vld [vmem:[#allocation9 + $0x88] sm:$0xff]  ;;  %v440_v13 = vld [vmem:[#allocation9 + $0x98] sm:$0xff] }
  0x4e   :  { %v421_v9 = vld [vmem:[#allocation9] sm:$0xff]  ;;  %v840_v10 = vpack.c.bf16 %v438_v8, %v437_v7  ;;  %v422_v11 = vld [vmem:[#allocation9 + $0x8] sm:$0xff]  ;;  %v844_v15 = vpack.c.bf16 %v440_v13, %v439_v12  ;;  %v423_v16 = vld [vmem:[#allocation9 + $0x10] sm:$0xff] }
  0x4f   :  { %v842_v14 = vpack.c.bf16 %v422_v11, %v421_v9  ;;  %v424_v17 = vld [vmem:[#allocation9 + $0x18] sm:$0xff]  ;;  %v903_v18 = vld [vmem:[#allocation6 + $0x30] sm:$0xff]   ;;  %v441_v19 = vld [vmem:[#allocation9 + $0xa0] sm:$0xff] }
  0x50   :  { %811 = vmatpush3.bf16.msra.mxu0 %v898_v1  ;;  %872 = vmatprep.subr.bf16.mxu1 %v840_v10  ;;  %v442_v20 = vld [vmem:[#allocation9 + $0xa8] sm:$0xff]  ;;  %v846_v21 = vpack.c.bf16 %v424_v17, %v423_v16  ;;  %v425_v23 = vld [vmem:[#allocation9 + $0x20] sm:$0xff]  ;;  %v904_v25 = vld [vmem:[#allocation6 + $0x38] sm:$0xff]  }
  0x51   :  { %812 = vmatprep.subr.bf16.mxu0 %v899_v2  ;;  %880 = vmatpush3.bf16.msra.mxu1 %v842_v14  ;;  %v848_v22 = vpack.c.bf16 %v442_v20, %v441_v19  ;;  %v426_v24 = vld [vmem:[#allocation9 + $0x28] sm:$0xff]  ;;  %v443_v26 = vld [vmem:[#allocation9 + $0xb0] sm:$0xff]  ;;  %v444_v27 = vld [vmem:[#allocation9 + $0xb8] sm:$0xff] }
  0x52   :  { %873 = vmatprep.subr.bf16.mxu1 %v844_v15  ;;  %v850_v28 = vpack.c.bf16 %v426_v24, %v425_v23  ;;  %v852_v29 = vpack.c.bf16 %v444_v27, %v443_v26  ;;  %v427_v30 = vld [vmem:[#allocation9 + $0x30] sm:$0xff]  ;;  %v428_v31 = vld [vmem:[#allocation9 + $0x38] sm:$0xff]  ;;  %v445_v32 = vld [vmem:[#allocation9 + $0xc0] sm:$0xff] }
  0x53   :  { %v446_v33 = vld [vmem:[#allocation9 + $0xc8] sm:$0xff]  ;;  %v854_v35 = vpack.c.bf16 %v428_v31, %v427_v30  ;;  %v907_v36 = vld [vmem:[#allocation3 + $0x10] sm:$0xff]   ;;  %v429_v38 = vld [vmem:[#allocation9 + $0x40] sm:$0xff] }
  0x54   :  { %813 = vmatpush3.bf16.msra.mxu0 %v899_v2  ;;  %v906_v34 = vld [vmem:[#allocation3 + $0x8] sm:$0xff]   ;;  %v856_v37 = vpack.c.bf16 %v446_v33, %v445_v32  ;;  %v447_v40 = vld [vmem:[#allocation9 + $0xd0] sm:$0xff]  ;;  %v448_v41 = vld [vmem:[#allocation9 + $0xd8] sm:$0xff] }
  0x55   :  { %814 = vmatprep.subr.bf16.mxu0 %v900_v3  ;;  %881 = vmatpush3.bf16.msra.mxu1 %v846_v21  ;;  %v430_v39 = vld [vmem:[#allocation9 + $0x48] sm:$0xff]  ;;  %v860_v43 = vpack.c.bf16 %v448_v41, %v447_v40  ;;  %v431_v44 = vld [vmem:[#allocation9 + $0x50] sm:$0xff]  ;;  %v432_v45 = vld [vmem:[#allocation9 + $0x58] sm:$0xff] }
  0x56   :  { %874 = vmatprep.subr.bf16.mxu1 %v848_v22  ;;  %v858_v42 = vpack.c.bf16 %v430_v39, %v429_v38  ;;  %v449_v46 = vld [vmem:[#allocation9 + $0xe0] sm:$0xff]  ;;  %v450_v47 = vld [vmem:[#allocation9 + $0xe8] sm:$0xff]  ;;  %v908_v48 = vld [vmem:[#allocation3 + $0x18] sm:$0xff]   ;;  %v862_v49 = vpack.c.bf16 %v432_v45, %v431_v44 }
  0x57   :  { %v909_v50 = vld [vmem:[#allocation3 + $0x20] sm:$0xff]   ;;  %v864_v51 = vpack.c.bf16 %v450_v47, %v449_v46  ;;  %v434_v53 = vld [vmem:[#allocation9 + $0x68] sm:$0xff]  ;;  %v451_v54 = vld [vmem:[#allocation9 + $0xf0] sm:$0xff] }
  0x58   :  { %815 = vmatpush3.bf16.msra.mxu0 %v900_v3  ;;  %v433_v52 = vld [vmem:[#allocation9 + $0x60] sm:$0xff]  ;;  %v452_v55 = vld [vmem:[#allocation9 + $0xf8] sm:$0xff]  ;;  %v435_v58 = vld [vmem:[#allocation9 + $0x70] sm:$0xff] }
  0x59   :  { %816 = vmatprep.subr.bf16.mxu0 %v901_v5  ;;  %882 = vmatpush3.bf16.msra.mxu1 %v850_v28  ;;  %v866_v56 = vpack.c.bf16 %v434_v53, %v433_v52  ;;  %v868_v57 = vpack.c.bf16 %v452_v55, %v451_v54  ;;  %v436_v59 = vld [vmem:[#allocation9 + $0x78] sm:$0xff]  ;;  %v910_v60 = vld [vmem:[#allocation3 + $0x28] sm:$0xff]   ;;  %v911_v62 = vld [vmem:[#allocation3 + $0x30] sm:$0xff]  }
  0x5a   :  { %875 = vmatprep.subr.bf16.mxu1 %v852_v29  ;;  %v870_v61 = vpack.c.bf16 %v436_v59, %v435_v58  ;;  %v912_v63 = vld [vmem:[#allocation3 + $0x38] sm:$0xff]   ;;  %v674_v0 = vld [vmem:[#allocation8] sm:$0xff]   ;;  %v706_v2 = vld [vmem:[#allocation8 + $0x10] sm:$0xff]  }
  0x5b   :  { %v675_v1 = vunpack.c.l.bf16 %v674_v0  ;;  %v683_v3 = vunpack.c.l.bf16 %v706_v2  ;;  %v676_v4 = vunpack.c.h.bf16 %v674_v0  ;;  %v684_v11 = vunpack.c.h.bf16 %v706_v2  ;;  %v709_v27 = vld [vmem:[#allocation8 + $0x28] sm:$0xff]   ;;  %v1147_v41 = vld [vmem:[%s1184_s4] ss:$0 sm:$0xff]  ;;  %s1039_s4 = smov [#allocation11]  }
  0x5c   :  { %817 = vmatpush3.bf16.msra.mxu0 %v901_v5  ;;  %v695_v31 = vunpack.c.l.bf16 %v709_v27  ;;  %v696_v33 = vunpack.c.h.bf16 %v709_v27  ;;  %s642_s17 = sshll.u32 %s1039_s4, 4  ;;  %s643_s17 = int_to_ptr.vmem [resolvable:$true] %s642_s17 }
  0x5d   :  { %818 = vmatprep.subr.bf16.mxu0 %v902_v6  ;;  %883 = vmatpush3.bf16.msra.mxu1 %v854_v35  ;;  %s1001_s18 = scalar_lea.vmem %s643_s17, 2048  ;;  %p1006_p5 = scmp.lt.s32.totalorder %s643_s17, %s643_s17 }
  0x5e   :  { %876 = vmatprep.subr.bf16.mxu1 %v856_v37  ;;  %544 = vmatprep.mubr.f32.mxu1 %v683_v3  ;;  %p1002_p4 = scmp.ne.s32.totalorder %s643_s17, %s1001_s18  ;;  %p1007_p6 = scmp.lt.s32.totalorder %s1001_s18, %s1001_s18 }
  0x60   :  { %819 = vmatpush3.bf16.msra.mxu0 %v902_v6  ;;  %v705_v6 = vld [vmem:[#allocation8 + $0x8] sm:$0xff]   ;;  %p1008_p7 = por %p1007_p6, %p1006_p5 }
  0x61   :  { %820 = vmatprep.subr.bf16.mxu0 %v903_v18  ;;  %884 = vmatpush3.bf16.msra.mxu1 %v858_v42  ;;  %v680_v12 = vunpack.c.h.bf16 %v705_v6 }
  0x62   :  { %877 = vmatprep.subr.bf16.mxu1 %v860_v43  ;;  %p1009_p8 = pnand %p1008_p7, %p1002_p4 }
  0x64   :  { %821 = vmatpush3.bf16.msra.mxu0 %v903_v18 }
  0x65   :  { %822 = vmatprep.subr.bf16.mxu0 %v904_v25  ;;  %885 = vmatpush3.bf16.msra.mxu1 %v862_v49 }
  0x66   :  { %878 = vmatprep.subr.bf16.mxu1 %v864_v51 }
  0x68   :  { %823 = vmatpush3.bf16.msra.mxu0 %v904_v25 }
  0x69   :  { %841 = vmatprep.subr.bf16.mxu0 %v840_v10  ;;  %886 = vmatpush3.bf16.msra.mxu1 %v866_v56  ;;  %v679_v10 = vunpack.c.l.bf16 %v705_v6 }
  0x6a   :  { %879 = vmatprep.subr.bf16.mxu1 %v868_v57 }
  0x6b   :  { %825 = vmatmul.mubr.bf16.vlgmr.msra.gmra.mrb[0].mxu0 %v906_v34  ;;  %v710_v34 = vld [vmem:[#allocation8 + $0x30] sm:$0xff]  }
  0x6c   :  { %828 = vmatprep.mubr.bf16.mxu0 %v907_v36  ;;  %843 = vmatpush3.bf16.msra.mxu0 %v842_v14  ;;  %v707_v14 = vld [vmem:[#allocation8 + $0x18] sm:$0xff]   ;;  %v700_v36 = vunpack.c.h.bf16 %v710_v34 }
  0x6d   :  { %845 = vmatprep.subr.bf16.mxu0 %v844_v15  ;;  %887 = vmatpush3.bf16.msra.mxu1 %v870_v61  ;;  %v687_v18 = vunpack.c.l.bf16 %v707_v14  ;;  %v688_v19 = vunpack.c.h.bf16 %v707_v14 }
  0x70   :  { %847 = vmatpush3.bf16.msra.mxu0 %v846_v21  ;;  %v708_v21 = vld [vmem:[#allocation8 + $0x20] sm:$0xff]  }
  0x71   :  { %849 = vmatprep.subr.bf16.mxu0 %v848_v22  ;;  %v691_v25 = vunpack.c.l.bf16 %v708_v21  ;;  %v692_v26 = vunpack.c.h.bf16 %v708_v21 }
  0x73   :  { %829 = vmatmul.mubr.bf16.gmra.mrb[4].mxu0 %v908_v48 }
  0x74   :  { %832 = vmatprep.mubr.bf16.mxu0 %v909_v50  ;;  %851 = vmatpush3.bf16.msra.mxu0 %v850_v28 }
  0x75   :  { %853 = vmatprep.subr.bf16.mxu0 %v852_v29 }
  0x78   :  { %855 = vmatpush3.bf16.msra.mxu0 %v854_v35  ;;  %v699_v35 = vunpack.c.l.bf16 %v710_v34 }
  0x79   :  { %857 = vmatprep.subr.bf16.mxu0 %v856_v37  ;;  %v711_v37 = vld [vmem:[#allocation8 + $0x38] sm:$0xff]  }
  0x7a   :  { %v703_v38 = vunpack.c.l.bf16 %v711_v37  ;;  %v704_v39 = vunpack.c.h.bf16 %v711_v37 }
  0x7b   :  { %833 = vmatmul.mubr.bf16.gmra.mrb[8].mxu0 %v910_v60 }
  0x7c   :  { %836 = vmatprep.mubr.bf16.mxu0 %v911_v62  ;;  %859 = vmatpush3.bf16.msra.mxu0 %v858_v42 }
  0x7d   :  { %861 = vmatprep.subr.bf16.mxu0 %v860_v43 }
  0x80   :  { %863 = vmatpush3.bf16.msra.mxu0 %v862_v49 }
  0x81   :  { %865 = vmatprep.subr.bf16.mxu0 %v864_v51 }
  0x83   :  { %837 = vmatmul.mubr.bf16.gmra.mrb[12].mxu0 %v912_v63 }
  0x84   :  { %867 = vmatpush3.bf16.msra.mxu0 %v866_v56  ;;  %524 = vmatprep.mubr.f32.mxu0 %v675_v1 }
  0x85   :  { %869 = vmatprep.subr.bf16.mxu0 %v868_v57 }
  0x88   :  { %871 = vmatpush3.bf16.msra.mxu0 %v870_v61 }
 0x13e   :  { %v826_v5 = vpop.f32.mrb[0].mxu0 }
 0x13f   :  { %v275_v7 = vpop.f32.mrb[1].mxu0 }
 0x140   :  { %v827_v8 = vpop.f32.mrb[2].mxu0  ;;  %525 = vmatmul.mubr.f32.vlgmr.msra.gmra.mrb[16].mxu0 %v275_v7 }
 0x141   :  { %v278_v9 = vpop.f32.mrb[3].mxu0  ;;  %529 = vmatprep.mubr.f32.mxu0 %v676_v4 }
 0x144   :  { %530 = vmatmul.mubr.f32.gmra.mrb[18].mxu0 %v278_v9 }
 0x145   :  { %534 = vmatprep.mubr.f32.mxu0 %v679_v10 }
 0x146   :  { %v830_v13 = vpop.f32.mrb[4].mxu0 }
 0x147   :  { %v291_v15 = vpop.f32.mrb[5].mxu0 }
 0x148   :  { %v831_v16 = vpop.f32.mrb[6].mxu0  ;;  %535 = vmatmul.mubr.f32.gmra.mrb[20].mxu0 %v826_v5  ;;  %545 = vmatmul.mubr.f32.vlgmr.msra.gmra.mrb[0].mxu1 %v291_v15 }
 0x149   :  { %v294_v17 = vpop.f32.mrb[7].mxu0  ;;  %539 = vmatprep.mubr.f32.mxu0 %v680_v12  ;;  %549 = vmatprep.mubr.f32.mxu1 %v684_v11 }
 0x14c   :  { %540 = vmatmul.mubr.f32.gmra.mrb[22].mxu0 %v827_v8  ;;  %550 = vmatmul.mubr.f32.gmra.mrb[2].mxu1 %v294_v17 }
 0x14d   :  { %554 = vmatprep.mubr.f32.mxu1 %v687_v18 }
 0x14e   :  { %v834_v20 = vpop.f32.mrb[8].mxu0 }
 0x14f   :  { %v307_v22 = vpop.f32.mrb[9].mxu0 }
 0x150   :  { %555 = vmatmul.mubr.f32.gmra.mrb[4].mxu1 %v830_v13  ;;  %v835_v23 = vpop.f32.mrb[10].mxu0 }
 0x151   :  { %559 = vmatprep.mubr.f32.mxu1 %v688_v19  ;;  %v310_v24 = vpop.f32.mrb[11].mxu0 }
 0x154   :  { %560 = vmatmul.mubr.f32.gmra.mrb[6].mxu1 %v831_v16 }
 0x155   :  { %564 = vmatprep.mubr.f32.mxu1 %v691_v25 }
 0x156   :  { %v838_v28 = vpop.f32.mrb[12].mxu0 }
 0x157   :  { %v323_v29 = vpop.f32.mrb[13].mxu0 }
 0x158   :  { %565 = vmatmul.mubr.f32.gmra.mrb[8].mxu1 %v307_v22  ;;  %v839_v30 = vpop.f32.mrb[14].mxu0 }
 0x159   :  { %569 = vmatprep.mubr.f32.mxu1 %v692_v26  ;;  %v326_v32 = vpop.f32.mrb[15].mxu0 }
 0x15c   :  { %570 = vmatmul.mubr.f32.gmra.mrb[10].mxu1 %v310_v24 }
 0x15d   :  { %574 = vmatprep.mubr.f32.mxu1 %v695_v31 }
 0x160   :  { %575 = vmatmul.mubr.f32.gmra.mrb[12].mxu1 %v834_v20 }
 0x161   :  { %579 = vmatprep.mubr.f32.mxu1 %v696_v33 }
 0x164   :  { %580 = vmatmul.mubr.f32.gmra.mrb[14].mxu1 %v835_v23 }
 0x165   :  { %584 = vmatprep.mubr.f32.mxu1 %v699_v35 }
 0x168   :  { %585 = vmatmul.mubr.f32.gmra.mrb[16].mxu1 %v323_v29 }
 0x169   :  { %589 = vmatprep.mubr.f32.mxu1 %v700_v36 }
 0x16c   :  { %590 = vmatmul.mubr.f32.gmra.mrb[18].mxu1 %v326_v32 }
 0x16d   :  { %594 = vmatprep.mubr.f32.mxu1 %v703_v38 }
 0x170   :  { %595 = vmatmul.mubr.f32.gmra.mrb[20].mxu1 %v838_v28 }
 0x171   :  { %599 = vmatprep.mubr.f32.mxu1 %v704_v39 }
 0x174   :  { %600 = vmatmul.mubr.f32.gmra.mrb[22].mxu1 %v839_v30 }
 0x213   :  { %v760_v40 = vpop.f32.mrb[16].mxu0 }
 0x214   :  { %v761_v42 = vpop.f32.mrb[17].mxu0 }
 0x215   :  { %v762_v43 = vadd.f32 %v761_v42, %v760_v40 }
 0x217   :  { %v527_v44 = vadd.f32 %v762_v43, %v1147_v41  ;;  %v763_v45 = vpop.f32.mrb[18].mxu0 }
 0x218   :  { %v764_v46 = vpop.f32.mrb[19].mxu0 }
 0x219   :  { %v605_v47 = vmax.f32 %v527_v44, 0.0  ;;  %v765_v48 = vadd.f32 %v764_v46, %v763_v45 }
 0x21b   :  { %621 = vst [vmem:[#allocation11] sm:$0xff] %v605_v47  ;;  %v532_v49 = vadd.f32 %v765_v48, %v1147_v41  ;;  %v766_v50 = vpop.f32.mrb[20].mxu0  ;;  %v772_v51 = vpop.f32.mrb[0].mxu1 }
 0x21c   :  { %v767_v52 = vpop.f32.mrb[21].mxu0  ;;  %v773_v53 = vpop.f32.mrb[1].mxu1 }
 0x21d   :  { %v606_v54 = vmax.f32 %v532_v49, 0.0  ;;  %v768_v55 = vadd.f32 %v767_v52, %v766_v50  ;;  %v774_v56 = vadd.f32 %v773_v53, %v772_v51 }
 0x21f   :  { %622 = vst [vmem:[#allocation11 + $0x8] sm:$0xff] %v606_v54  ;;  %v537_v57 = vadd.f32 %v768_v55, %v1147_v41  ;;  %v547_v58 = vadd.f32 %v774_v56, %v1147_v41  ;;  %v769_v59 = vpop.f32.mrb[22].mxu0  ;;  %v775_v60 = vpop.f32.mrb[2].mxu1 }
 0x220   :  { %v770_v61 = vpop.f32.mrb[23].mxu0  ;;  %v776_v62 = vpop.f32.mrb[3].mxu1 }
 0x221   :  { %v607_v63 = vmax.f32 %v537_v57, 0.0  ;;  %v609_v0 = vmax.f32 %v547_v58, 0.0  ;;  %v771_v1 = vadd.f32 %v770_v61, %v769_v59  ;;  %v777_v2 = vadd.f32 %v776_v62, %v775_v60 }
 0x223   :  { %623 = vst [vmem:[#allocation11 + $0x10] sm:$0xff] %v607_v63  ;;  %625 = vst [vmem:[#allocation11 + $0x20] sm:$0xff] %v609_v0  ;;  %v542_v3 = vadd.f32 %v771_v1, %v1147_v41  ;;  %v552_v4 = vadd.f32 %v777_v2, %v1147_v41  ;;  %v778_v5 = vpop.f32.mrb[4].mxu1 }
 0x224   :  { %v779_v6 = vpop.f32.mrb[5].mxu1 }
 0x225   :  { %v608_v7 = vmax.f32 %v542_v3, 0.0  ;;  %v610_v8 = vmax.f32 %v552_v4, 0.0  ;;  %v780_v9 = vadd.f32 %v779_v6, %v778_v5 }
 0x227   :  { %624 = vst [vmem:[#allocation11 + $0x18] sm:$0xff] %v608_v7  ;;  %626 = vst [vmem:[#allocation11 + $0x28] sm:$0xff] %v610_v8  ;;  %v557_v10 = vadd.f32 %v780_v9, %v1147_v41  ;;  %v781_v11 = vpop.f32.mrb[6].mxu1 }
 0x228   :  { %v782_v12 = vpop.f32.mrb[7].mxu1 }
 0x229   :  { %v611_v13 = vmax.f32 %v557_v10, 0.0  ;;  %v783_v14 = vadd.f32 %v782_v12, %v781_v11 }
 0x22b   :  { %627 = vst [vmem:[#allocation11 + $0x30] sm:$0xff] %v611_v13  ;;  %v562_v15 = vadd.f32 %v783_v14, %v1147_v41  ;;  %v784_v16 = vpop.f32.mrb[8].mxu1 }
 0x22c   :  { %v785_v17 = vpop.f32.mrb[9].mxu1 }
 0x22d   :  { %v612_v18 = vmax.f32 %v562_v15, 0.0  ;;  %v786_v19 = vadd.f32 %v785_v17, %v784_v16 }
 0x22f   :  { %628 = vst [vmem:[#allocation11 + $0x38] sm:$0xff] %v612_v18  ;;  %v567_v20 = vadd.f32 %v786_v19, %v1147_v41  ;;  %v787_v21 = vpop.f32.mrb[10].mxu1 }
 0x230   :  { %v788_v22 = vpop.f32.mrb[11].mxu1 }
 0x231   :  { %v613_v23 = vmax.f32 %v567_v20, 0.0  ;;  %v789_v24 = vadd.f32 %v788_v22, %v787_v21 }
 0x233   :  { %629 = vst [vmem:[#allocation11 + $0x40] sm:$0xff] %v613_v23  ;;  %v572_v25 = vadd.f32 %v789_v24, %v1147_v41  ;;  %v790_v26 = vpop.f32.mrb[12].mxu1 }
 0x234   :  { %v791_v27 = vpop.f32.mrb[13].mxu1 }
 0x235   :  { %v614_v28 = vmax.f32 %v572_v25, 0.0  ;;  %v792_v29 = vadd.f32 %v791_v27, %v790_v26 }
 0x237   :  { %630 = vst [vmem:[#allocation11 + $0x48] sm:$0xff] %v614_v28  ;;  %v577_v30 = vadd.f32 %v792_v29, %v1147_v41  ;;  %v793_v31 = vpop.f32.mrb[14].mxu1 }
 0x238   :  { %v794_v32 = vpop.f32.mrb[15].mxu1 }
 0x239   :  { %v615_v33 = vmax.f32 %v577_v30, 0.0  ;;  %v795_v34 = vadd.f32 %v794_v32, %v793_v31 }
 0x23b   :  { %631 = vst [vmem:[#allocation11 + $0x50] sm:$0xff] %v615_v33  ;;  %v582_v35 = vadd.f32 %v795_v34, %v1147_v41  ;;  %v796_v36 = vpop.f32.mrb[16].mxu1 }
 0x23c   :  { %v797_v37 = vpop.f32.mrb[17].mxu1 }
 0x23d   :  { %v616_v38 = vmax.f32 %v582_v35, 0.0  ;;  %v798_v39 = vadd.f32 %v797_v37, %v796_v36 }
 0x23f   :  { %632 = vst [vmem:[#allocation11 + $0x58] sm:$0xff] %v616_v38  ;;  %v587_v40 = vadd.f32 %v798_v39, %v1147_v41  ;;  %v799_v42 = vpop.f32.mrb[18].mxu1 }
 0x240   :  { %v800_v43 = vpop.f32.mrb[19].mxu1 }
 0x241   :  { %v617_v44 = vmax.f32 %v587_v40, 0.0  ;;  %v801_v45 = vadd.f32 %v800_v43, %v799_v42 }
 0x243   :  { %633 = vst [vmem:[#allocation11 + $0x60] sm:$0xff] %v617_v44  ;;  %v592_v46 = vadd.f32 %v801_v45, %v1147_v41  ;;  %v802_v47 = vpop.f32.mrb[20].mxu1 }
 0x244   :  { %v803_v48 = vpop.f32.mrb[21].mxu1 }
 0x245   :  { %v618_v49 = vmax.f32 %v592_v46, 0.0  ;;  %v804_v50 = vadd.f32 %v803_v48, %v802_v47 }
 0x247   :  { %634 = vst [vmem:[#allocation11 + $0x68] sm:$0xff] %v618_v49  ;;  %v597_v51 = vadd.f32 %v804_v50, %v1147_v41  ;;  %v805_v52 = vpop.f32.mrb[22].mxu1 }
 0x248   :  { %v806_v53 = vpop.f32.mrb[23].mxu1 }
 0x249   :  { %v619_v54 = vmax.f32 %v597_v51, 0.0  ;;  %v807_v55 = vadd.f32 %v806_v53, %v805_v52 }
 0x24b   :  { %635 = vst [vmem:[#allocation11 + $0x70] sm:$0xff] %v619_v54  ;;  %v602_v56 = vadd.f32 %v807_v55, %v1147_v41 }
 0x24d   :  { %v620_v57 = vmax.f32 %v602_v56, 0.0 }
 0x24f   :  { %636 = vst [vmem:[#allocation11 + $0x78] sm:$0xff] %v620_v57 }
 0x250   :  { %1012 = shalt.err (!%p1009_p8)
}
 0x251   :  { %s1013_s22 = scalar_lea.hbm %s1185_s5, 2048 }
 0x252   :  { %p1014_p9 = scmp.ne.s32.totalorder %s1185_s5, %s1013_s22  ;;  %p1017_p10 = scmp.lt.u32.totalorder %s1013_s22, %s1185_s5 }
 0x254   :  { %p1019_p11 = pnand %p1017_p10, %p1014_p9 }
 0x256   :  { %1022 = shalt.err (!%p1019_p11)
}
 0x257   :  { %648 = dma.vmem_to_hbm [thread:$0]  %s643_s17, 2048, %s1185_s5, [#allocation5], %s1037_s2, %s1037_s2, %s1038_s30  }
 0x258   :  { %1029 = dma.done.wait [#allocation5], 2048  }
 0x259   :  { %1030 = vsyncadd [#allocation5], 4294965248 }
 0x25a   :  { %652 = vsyncpa [#allocation4], 1 }
 0x25b   :  { %653 = vsyncpa [#allocation7], 1 }
 0x25c   :  { %654 = vsyncpa [#allocation10], 1 }
 0x25d   :  { %655 = vsyncpa [#allocation5], 1 }

</bundles_post_ra>
